<compile_context>
chip_gen: v7x
topology: tpu7x:2x2x1
jax: 0.10.0
libtpu: 0.0.40
codegen_flags: <defaults>
</compile_context>

<pallas_src>
import functools

import jax
import jax.numpy as jnp
from jax.experimental import pallas as pl
from jax.experimental.pallas import tpu as pltpu


def _round_up(x, m):
    return ((x + m - 1) // m) * m


# ----------------------------- fused Pallas kernel ---------------------------

def _decoder_kernel(x_ref, h_ref, c_ref, w_ih_ref, w_hh_ref, b_ref,
                    fc_w_ref, fc_b_ref, pred_ref, h_out_ref, c_out_ref,
                    *, hid_dim):
    """Fused multi-layer LSTM single step + Linear head (packed gates).

    x_ref    : (Bp, In8)       f32  layer-0 input, zero padded
    h_ref    : (L, Bp, Hs)     f32  previous hidden (aliased with h_out_ref)
    c_ref    : (L, Bp, Hs)     f32  previous cell   (aliased with c_out_ref)
    w_ih_ref : (L, In8, Gp)    bf16 input->gate weights, packed gate layout
    w_hh_ref : (L, Hs,  Gp)    bf16 hidden->gate weights, packed gate layout
    b_ref    : (L, 1,   Gp)    f32  b_ih + b_hh
    fc_w_ref : (Hs, Op)        bf16 fc_out weight (pre-transposed)
    fc_b_ref : (1, Op)         f32  fc_out bias
    pred_ref : (Bp, Op)        f32  lane-dense prediction
    h_out_ref: (L, Bp, Hs)     f32
    c_out_ref: (L, Bp, Hs)     f32

    Gate order follows PyTorch: i, f, g, o packed contiguously in 4*H lanes.
    """
    n_layers = h_ref.shape[0]
    Hs = h_ref.shape[2]
    In8 = x_ref.shape[1]
    H = hid_dim

    x = x_ref[...]                                           # (Bp, In8) f32
    h_last = None
    for l in range(n_layers):                                # static unroll over layers
        h_prev = h_ref[l]                                    # (Bp, Hs) f32
        c_prev = c_ref[l]                                    # (Bp, Hs) f32
        c_prev_h = c_prev if Hs == H else c_prev[:, :H]

        # bf16 weights streamed from HBM; up-cast once, accumulate in f32.
        w_ih = w_ih_ref[l].astype(jnp.float32)               # (In8, Gp)
        w_hh = w_hh_ref[l].astype(jnp.float32)               # (Hs,  Gp)
        gates = (jnp.dot(x, w_ih, preferred_element_type=jnp.float32)
                 + jnp.dot(h_prev, w_hh, preferred_element_type=jnp.float32)
                 + b_ref[l])                                  # (Bp, Gp) f32

        # 2 EUP passes over the packed gate vector, then static lane slices.
        sig = jax.nn.sigmoid(gates)
        th = jnp.tanh(gates)
        i = sig[:, 0 * H:1 * H]
        f = sig[:, 1 * H:2 * H]
        g = th[:, 2 * H:3 * H]
        o = sig[:, 3 * H:4 * H]

        c_new = f * c_prev_h + i * g                          # (Bp, H) f32
        h_new = o * jnp.tanh(c_new)                           # (Bp, H) f32
        if Hs > H:                                            # static generic-path pad
            c_new = jnp.pad(c_new, ((0, 0), (0, Hs - H)))
            h_new = jnp.pad(h_new, ((0, 0), (0, Hs - H)))

        h_out_ref[l] = h_new
        c_out_ref[l] = c_new
        h_last = h_new

        if l + 1 < n_layers:                                  # eval mode: no inter-layer dropout
            x = h_new if In8 == Hs else jnp.pad(h_new, ((0, 0), (0, In8 - Hs)))

    fc_w = fc_w_ref[...].astype(jnp.float32)                  # (Hs, Op)
    pred_ref[...] = (jnp.dot(h_last, fc_w, preferred_element_type=jnp.float32)
                     + fc_b_ref[...])


# ------------------------------ JAX wrappers ----------------------------------

def decoder_step_padded(x_p, h_p, c_p, params):
    """One fused decode step on padded buffers (single pallas_call).

    x_p : (Bp, In8) f32, h_p/c_p : (L, Bp, Hs) f32.
    h/c are updated via input_output_aliases (in-place semantics); keep state in
    this padded layout across autoregressive steps and un-pad once at the end.
    """
    d = params["dims"]
    L, Bp, Hs = h_p.shape
    Op = params["fc_b"].shape[-1]

    kernel = functools.partial(_decoder_kernel, hid_dim=d["H"])
    return pl.pallas_call(
        kernel,
        out_shape=(jax.ShapeDtypeStruct((Bp, Op), jnp.float32),
                   jax.ShapeDtypeStruct((L, Bp, Hs), jnp.float32),
                   jax.ShapeDtypeStruct((L, Bp, Hs), jnp.float32)),
        in_specs=[pl.BlockSpec(memory_space=pltpu.MemorySpace.VMEM)] * 8,
        out_specs=(pl.BlockSpec(memory_space=pltpu.MemorySpace.VMEM),) * 3,
        input_output_aliases={1: 1, 2: 2},   # h, c updated in place
    )(x_p, h_p, c_p, params["w_ih"], params["w_hh"], params["b"],
      params["fc_w"], params["fc_b"])


def decoder_forward(inp, hidden, cell, params):
    """Mirror of Decoder.forward.

    inp    : (B, output_dim)
    hidden : (n_layers, B, hid_dim)
    cell   : (n_layers, B, hid_dim)
    returns (prediction (B, 1, output_dim), hidden, cell)

    Note: torch's output.squeeze(0) only changes rank when B == 1; here the
    prediction is always (B, 1, output_dim).
    Padded-lane/batch entries of the state must be zero on entry (this wrapper
    guarantees it); decoder_step_padded then maintains that invariant itself.
    """
    d = params["dims"]
    O, H, In8, Hs = d["O"], d["H"], d["In8"], d["Hs"]
    B = inp.shape[0]
    L = hidden.shape[0]
    Bp = _round_up(max(B, 8), 8)

    x_p = jnp.zeros((Bp, In8), jnp.float32).at[:B, :O].set(inp)
    h_p = jnp.zeros((L, Bp, Hs), jnp.float32).at[:, :B, :H].set(hidden)
    c_p = jnp.zeros((L, Bp, Hs), jnp.float32).at[:, :B, :H].set(cell)

    pred_p, h_out_p, c_out_p = decoder_step_padded(x_p, h_p, c_p, params)

    prediction = pred_p[:B, :O][:, None, :]       # (B, 1, output_dim)
    return prediction, h_out_p[:, :B, :H], c_out_p[:, :B, :H]


# --------------------------- deterministic params ----------------------------

def init_params(key, output_dim, hid_dim, n_layers, dtype=jnp.float32):
    """PyTorch-style uniform(-1/sqrt(H), 1/sqrt(H)) init, deterministic.

    Weights are stored bf16 in packed-gate layout (total 4H lanes padded to a
    128 multiple; K rows padded to 8 sublanes only).  The pure-JAX reference
    under "ref" uses the SAME bf16-quantized weights (cast to f32).
    """
    H, O = hid_dim, output_dim
    In8 = _round_up(max(O, H), 8)        # layer-0 input rows (sublane padded)
    Hs = _round_up(H, 8)                 # stored state width
    Gp = _round_up(4 * H, 128)           # packed gate lane width (i|f|g|o)
    Op = _round_up(O, 128)               # lane-dense prediction width

    k = 1.0 / jnp.sqrt(jnp.float32(H))
    keys = jax.random.split(key, 4 * n_layers + 2)

    w_ih_layers, w_hh_layers, b_layers = [], [], []
    ref_wih_t, ref_whh_t, ref_b = [], [], []
    for l in range(n_layers):
        in_dim = O if l == 0 else H
        kw1, kw2, kb1, kb2 = keys[4 * l:4 * l + 4]
        # torch nn.LSTM layout: (4H, in) with gate order i, f, g, o
        w_ih = jax.random.uniform(kw1, (4 * H, in_dim), dtype, -k, k)
        w_hh = jax.random.uniform(kw2, (4 * H, H), dtype, -k, k)
        b_ih = jax.random.uniform(kb1, (4 * H,), dtype, -k, k)
        b_hh = jax.random.uniform(kb2, (4 * H,), dtype, -k, k)

        w_ih_bf = w_ih.astype(jnp.bfloat16)
        w_hh_bf = w_hh.astype(jnp.bfloat16)

        ref_wih_t.append(w_ih_bf.astype(jnp.float32).T)       # (in_dim, 4H)
        ref_whh_t.append(w_hh_bf.astype(jnp.float32).T)       # (H, 4H)
        ref_b.append((b_ih + b_hh)[None, :])                  # (1, 4H)

        # packed gates: only the TOTAL 4H width is padded (to Gp); K rows to 8.
        w_ih_layers.append(jnp.pad(w_ih_bf.T, ((0, In8 - in_dim), (0, Gp - 4 * H))))
        w_hh_layers.append(jnp.pad(w_hh_bf.T, ((0, Hs - H), (0, Gp - 4 * H))))
        b_layers.append(jnp.pad((b_ih + b_hh)[None, :], ((0, 0), (0, Gp - 4 * H))))

    kfw, kfb = keys[-2:]
    fc_w = jax.random.uniform(kfw, (O, H), dtype, -k, k)
    fc_b = jax.random.uniform(kfb, (O,), dtype, -k, k)
    fc_w_bf = fc_w.astype(jnp.bfloat16)

    return {
        "w_ih": jnp.stack(w_ih_layers, axis=0),                    # (L, In8, Gp) bf16
        "w_hh": jnp.stack(w_hh_layers, axis=0),                    # (L, Hs,  Gp) bf16
        "b": jnp.stack(b_layers, axis=0),                          # (L, 1,   Gp) f32
        "fc_w": jnp.pad(fc_w_bf.T, ((0, Hs - H), (0, Op - O))),    # (Hs, Op) bf16
        "fc_b": jnp.pad(fc_b, (0, Op - O))[None, :],               # (1, Op)  f32
        "dims": {"O": O, "H": H, "In8": In8, "Hs": Hs, "Gp": Gp, "Op": Op},
        "ref": {
            "w_ih_t": ref_wih_t,     # list of (in_dim, 4H)
            "w_hh_t": ref_whh_t,     # list of (H, 4H)
            "b": ref_b,              # list of (1, 4H)
            "fc_w_t": fc_w_bf.astype(jnp.float32).T,   # (H, O)
            "fc_b": fc_b[None, :],                     # (1, O)
        },
    }


# --------------------------- pure-JAX reference -------------------------------

def _reference_forward(inp, hidden, cell, ref):
    H = hidden.shape[2]
    x = inp
    hs, cs = [], []
    for l in range(hidden.shape[0]):
        gates = (jnp.dot(x, ref["w_ih_t"][l], precision=jax.lax.Precision.HIGHEST)
                 + jnp.dot(hidden[l], ref["w_hh_t"][l], precision=jax.lax.Precision.HIGHEST)
                 + ref["b"][l])
        i = jax.nn.sigmoid(gates[:, 0 * H:1 * H])
        f = jax.nn.sigmoid(gates[:, 1 * H:2 * H])
        g = jnp.tanh(gates[:, 2 * H:3 * H])
        o = jax.nn.sigmoid(gates[:, 3 * H:4 * H])
        c = f * cell[l] + i * g
        h = o * jnp.tanh(c)
        hs.append(h)
        cs.append(c)
        x = h
    pred = (jnp.dot(x, ref["fc_w_t"], precision=jax.lax.Precision.HIGHEST)
            + ref["fc_b"])
    return pred[:, None, :], jnp.stack(hs, axis=0), jnp.stack(cs, axis=0)


# ---------------------------------- main --------------------------------------

if __name__ == "__main__":
    output_dim = 16
    hid_dim = 32
    n_layers = 2
    batch = 2

    key = jax.random.PRNGKey(0)
    k_inp, k_h, k_c, k_p = jax.random.split(key, 4)

    inp = jax.random.normal(k_inp, (batch, output_dim), jnp.float32)
    hidden = jax.random.normal(k_h, (n_layers, batch, hid_dim), jnp.float32)
    cell = jax.random.normal(k_c, (n_layers, batch, hid_dim), jnp.float32)
    params = init_params(k_p, output_dim, hid_dim, n_layers)

    prediction, hidden_out, cell_out = decoder_forward(inp, hidden, cell, params)
    jax.block_until_ready((prediction, hidden_out, cell_out))

    assert prediction.shape == (batch, 1, output_dim)
    assert hidden_out.shape == (n_layers, batch, hid_dim)
    assert cell_out.shape == (n_layers, batch, hid_dim)

    # correctness vs. pure-JAX reference (same bf16-quantized weights)
    pred_r, hid_r, cell_r = _reference_forward(inp, hidden, cell, params["ref"])
    assert jnp.allclose(prediction, pred_r, rtol=1e-3, atol=1e-3)
    assert jnp.allclose(hidden_out, hid_r, rtol=1e-3, atol=1e-3)
    assert jnp.allclose(cell_out, cell_r, rtol=1e-3, atol=1e-3)

    print("KERNEL_OK")
</pallas_src>

<mosaic_0001>
module attributes {stable_mosaic.version = 11 : i64} {
  func.func @_decoder_kernel(%arg0: memref<8x32xf32, #tpu.memory_space<vmem>>, %arg1: memref<2x8x32xf32, #tpu.memory_space<vmem>>, %arg2: memref<2x8x32xf32, #tpu.memory_space<vmem>>, %arg3: memref<2x32x128xbf16, #tpu.memory_space<vmem>>, %arg4: memref<2x32x128xbf16, #tpu.memory_space<vmem>>, %arg5: memref<2x1x128xf32, #tpu.memory_space<vmem>>, %arg6: memref<32x128xbf16, #tpu.memory_space<vmem>>, %arg7: memref<1x128xf32, #tpu.memory_space<vmem>>, %arg8: memref<8x128xf32, #tpu.memory_space<vmem>>, %arg9: memref<2x8x32xf32, #tpu.memory_space<vmem>>, %arg10: memref<2x8x32xf32, #tpu.memory_space<vmem>>) attributes {dimension_semantics = [], scalar_prefetch = 0 : i64, scratch_operands = 0 : i64, tpu.core_type = #tpu.core_type<tc>} {
    %c0 = arith.constant 0 : index
    %c0_0 = arith.constant 0 : index
    %0 = vector.load %arg0[%c0, %c0_0] : memref<8x32xf32, #tpu.memory_space<vmem>>, vector<8x32xf32>
    %c0_1 = arith.constant 0 : index
    %c0_2 = arith.constant 0 : index
    %c0_3 = arith.constant 0 : index
    %1 = vector.load %arg1[%c0_1, %c0_2, %c0_3] : memref<2x8x32xf32, #tpu.memory_space<vmem>>, vector<1x8x32xf32>
    %2 = vector.shape_cast %1 : vector<1x8x32xf32> to vector<8x32xf32>
    %c0_4 = arith.constant 0 : index
    %c0_5 = arith.constant 0 : index
    %c0_6 = arith.constant 0 : index
    %3 = vector.load %arg2[%c0_4, %c0_5, %c0_6] : memref<2x8x32xf32, #tpu.memory_space<vmem>>, vector<1x8x32xf32>
    %4 = vector.shape_cast %3 : vector<1x8x32xf32> to vector<8x32xf32>
    %c0_7 = arith.constant 0 : index
    %c0_8 = arith.constant 0 : index
    %c0_9 = arith.constant 0 : index
    %5 = vector.load %arg3[%c0_7, %c0_8, %c0_9] : memref<2x32x128xbf16, #tpu.memory_space<vmem>>, vector<1x32x128xbf16>
    %6 = vector.shape_cast %5 : vector<1x32x128xbf16> to vector<32x128xbf16>
    %7 = arith.extf %6 : vector<32x128xbf16> to vector<32x128xf32>
    %c0_10 = arith.constant 0 : index
    %c0_11 = arith.constant 0 : index
    %c0_12 = arith.constant 0 : index
    %8 = vector.load %arg4[%c0_10, %c0_11, %c0_12] : memref<2x32x128xbf16, #tpu.memory_space<vmem>>, vector<1x32x128xbf16>
    %9 = vector.shape_cast %8 : vector<1x32x128xbf16> to vector<32x128xbf16>
    %10 = arith.extf %9 : vector<32x128xbf16> to vector<32x128xf32>
    %cst = arith.constant dense<0.000000e+00> : vector<8x128xf32>
    %11 = tpu.matmul %0, %7, %cst {dimension_numbers = #tpu.dot_dimension_numbers<[1], [0], [0], [1], [0, 0, 1, 1], [], []>} : vector<8x32xf32>, vector<32x128xf32>, vector<8x128xf32> -> vector<8x128xf32>
    %cst_13 = arith.constant dense<0.000000e+00> : vector<8x128xf32>
    %12 = tpu.matmul %2, %10, %cst_13 {dimension_numbers = #tpu.dot_dimension_numbers<[1], [0], [0], [1], [0, 0, 1, 1], [], []>} : vector<8x32xf32>, vector<32x128xf32>, vector<8x128xf32> -> vector<8x128xf32>
    %13 = arith.addf %11, %12 : vector<8x128xf32>
    %c0_14 = arith.constant 0 : index
    %c0_15 = arith.constant 0 : index
    %c0_16 = arith.constant 0 : index
    %14 = vector.load %arg5[%c0_14, %c0_15, %c0_16] : memref<2x1x128xf32, #tpu.memory_space<vmem>>, vector<1x1x128xf32>
    %15 = vector.shape_cast %14 : vector<1x1x128xf32> to vector<1x128xf32>
    %16 = vector.broadcast %15 : vector<1x128xf32> to vector<8x128xf32>
    %17 = arith.addf %13, %16 : vector<8x128xf32>
    %18 = arith.negf %17 : vector<8x128xf32>
    %19 = math.exp %18 : vector<8x128xf32>
    %cst_17 = arith.constant 1.000000e+00 : f32
    %20 = vector.broadcast %cst_17 : f32 to vector<8x128xf32>
    %21 = arith.addf %20, %19 : vector<8x128xf32>
    %22 = arith.divf %20, %21 : vector<8x128xf32>
    %23 = math.tanh %17 : vector<8x128xf32>
    %24 = vector.extract_strided_slice %22 {offsets = [0, 0], sizes = [8, 32], strides = [1, 1]} : vector<8x128xf32> to vector<8x32xf32>
    %25 = vector.extract_strided_slice %22 {offsets = [0, 32], sizes = [8, 32], strides = [1, 1]} : vector<8x128xf32> to vector<8x32xf32>
    %26 = vector.extract_strided_slice %23 {offsets = [0, 64], sizes = [8, 32], strides = [1, 1]} : vector<8x128xf32> to vector<8x32xf32>
    %27 = vector.extract_strided_slice %22 {offsets = [0, 96], sizes = [8, 32], strides = [1, 1]} : vector<8x128xf32> to vector<8x32xf32>
    %28 = arith.mulf %25, %4 : vector<8x32xf32>
    %29 = arith.mulf %24, %26 : vector<8x32xf32>
    %30 = arith.addf %28, %29 : vector<8x32xf32>
    %31 = math.tanh %30 : vector<8x32xf32>
    %32 = arith.mulf %27, %31 : vector<8x32xf32>
    %c0_18 = arith.constant 0 : index
    %c0_19 = arith.constant 0 : index
    %c0_20 = arith.constant 0 : index
    %33 = vector.load %arg9[%c0_18, %c0_19, %c0_20] : memref<2x8x32xf32, #tpu.memory_space<vmem>>, vector<1x8x32xf32>
    %34 = vector.shape_cast %33 : vector<1x8x32xf32> to vector<8x32xf32>
    %35 = vector.shape_cast %32 : vector<8x32xf32> to vector<1x8x32xf32>
    tpu.vector_store %arg9[%c0_18, %c0_19, %c0_20], %35 {strides = array<i32>} : memref<2x8x32xf32, #tpu.memory_space<vmem>>, vector<1x8x32xf32>,
    %c0_21 = arith.constant 0 : index
    %c0_22 = arith.constant 0 : index
    %c0_23 = arith.constant 0 : index
    %36 = vector.load %arg10[%c0_21, %c0_22, %c0_23] : memref<2x8x32xf32, #tpu.memory_space<vmem>>, vector<1x8x32xf32>
    %37 = vector.shape_cast %36 : vector<1x8x32xf32> to vector<8x32xf32>
    %38 = vector.shape_cast %30 : vector<8x32xf32> to vector<1x8x32xf32>
    tpu.vector_store %arg10[%c0_21, %c0_22, %c0_23], %38 {strides = array<i32>} : memref<2x8x32xf32, #tpu.memory_space<vmem>>, vector<1x8x32xf32>,
    %c1 = arith.constant 1 : index
    %c0_24 = arith.constant 0 : index
    %c0_25 = arith.constant 0 : index
    %39 = vector.load %arg1[%c1, %c0_24, %c0_25] : memref<2x8x32xf32, #tpu.memory_space<vmem>>, vector<1x8x32xf32>
    %40 = vector.shape_cast %39 : vector<1x8x32xf32> to vector<8x32xf32>
    %c1_26 = arith.constant 1 : index
    %c0_27 = arith.constant 0 : index
    %c0_28 = arith.constant 0 : index
    %41 = vector.load %arg2[%c1_26, %c0_27, %c0_28] : memref<2x8x32xf32, #tpu.memory_space<vmem>>, vector<1x8x32xf32>
    %42 = vector.shape_cast %41 : vector<1x8x32xf32> to vector<8x32xf32>
    %c1_29 = arith.constant 1 : index
    %c0_30 = arith.constant 0 : index
    %c0_31 = arith.constant 0 : index
    %43 = vector.load %arg3[%c1_29, %c0_30, %c0_31] : memref<2x32x128xbf16, #tpu.memory_space<vmem>>, vector<1x32x128xbf16>
    %44 = vector.shape_cast %43 : vector<1x32x128xbf16> to vector<32x128xbf16>
    %45 = arith.extf %44 : vector<32x128xbf16> to vector<32x128xf32>
    %c1_32 = arith.constant 1 : index
    %c0_33 = arith.constant 0 : index
    %c0_34 = arith.constant 0 : index
    %46 = vector.load %arg4[%c1_32, %c0_33, %c0_34] : memref<2x32x128xbf16, #tpu.memory_space<vmem>>, vector<1x32x128xbf16>
    %47 = vector.shape_cast %46 : vector<1x32x128xbf16> to vector<32x128xbf16>
    %48 = arith.extf %47 : vector<32x128xbf16> to vector<32x128xf32>
    %cst_35 = arith.constant dense<0.000000e+00> : vector<8x128xf32>
    %49 = tpu.matmul %32, %45, %cst_35 {dimension_numbers = #tpu.dot_dimension_numbers<[1], [0], [0], [1], [0, 0, 1, 1], [], []>} : vector<8x32xf32>, vector<32x128xf32>, vector<8x128xf32> -> vector<8x128xf32>
    %cst_36 = arith.constant dense<0.000000e+00> : vector<8x128xf32>
    %50 = tpu.matmul %40, %48, %cst_36 {dimension_numbers = #tpu.dot_dimension_numbers<[1], [0], [0], [1], [0, 0, 1, 1], [], []>} : vector<8x32xf32>, vector<32x128xf32>, vector<8x128xf32> -> vector<8x128xf32>
    %51 = arith.addf %49, %50 : vector<8x128xf32>
    %c1_37 = arith.constant 1 : index
    %c0_38 = arith.constant 0 : index
    %c0_39 = arith.constant 0 : index
    %52 = vector.load %arg5[%c1_37, %c0_38, %c0_39] : memref<2x1x128xf32, #tpu.memory_space<vmem>>, vector<1x1x128xf32>
    %53 = vector.shape_cast %52 : vector<1x1x128xf32> to vector<1x128xf32>
    %54 = vector.broadcast %53 : vector<1x128xf32> to vector<8x128xf32>
    %55 = arith.addf %51, %54 : vector<8x128xf32>
    %56 = arith.negf %55 : vector<8x128xf32>
    %57 = math.exp %56 : vector<8x128xf32>
    %cst_40 = arith.constant 1.000000e+00 : f32
    %58 = vector.broadcast %cst_40 : f32 to vector<8x128xf32>
    %59 = arith.addf %58, %57 : vector<8x128xf32>
    %60 = arith.divf %58, %59 : vector<8x128xf32>
    %61 = math.tanh %55 : vector<8x128xf32>
    %62 = vector.extract_strided_slice %60 {offsets = [0, 0], sizes = [8, 32], strides = [1, 1]} : vector<8x128xf32> to vector<8x32xf32>
    %63 = vector.extract_strided_slice %60 {offsets = [0, 32], sizes = [8, 32], strides = [1, 1]} : vector<8x128xf32> to vector<8x32xf32>
    %64 = vector.extract_strided_slice %61 {offsets = [0, 64], sizes = [8, 32], strides = [1, 1]} : vector<8x128xf32> to vector<8x32xf32>
    %65 = vector.extract_strided_slice %60 {offsets = [0, 96], sizes = [8, 32], strides = [1, 1]} : vector<8x128xf32> to vector<8x32xf32>
    %66 = arith.mulf %63, %42 : vector<8x32xf32>
    %67 = arith.mulf %62, %64 : vector<8x32xf32>
    %68 = arith.addf %66, %67 : vector<8x32xf32>
    %69 = math.tanh %68 : vector<8x32xf32>
    %70 = arith.mulf %65, %69 : vector<8x32xf32>
    %c1_41 = arith.constant 1 : index
    %c0_42 = arith.constant 0 : index
    %c0_43 = arith.constant 0 : index
    %71 = vector.load %arg9[%c1_41, %c0_42, %c0_43] : memref<2x8x32xf32, #tpu.memory_space<vmem>>, vector<1x8x32xf32>
    %72 = vector.shape_cast %71 : vector<1x8x32xf32> to vector<8x32xf32>
    %73 = vector.shape_cast %70 : vector<8x32xf32> to vector<1x8x32xf32>
    tpu.vector_store %arg9[%c1_41, %c0_42, %c0_43], %73 {strides = array<i32>} : memref<2x8x32xf32, #tpu.memory_space<vmem>>, vector<1x8x32xf32>,
    %c1_44 = arith.constant 1 : index
    %c0_45 = arith.constant 0 : index
    %c0_46 = arith.constant 0 : index
    %74 = vector.load %arg10[%c1_44, %c0_45, %c0_46] : memref<2x8x32xf32, #tpu.memory_space<vmem>>, vector<1x8x32xf32>
    %75 = vector.shape_cast %74 : vector<1x8x32xf32> to vector<8x32xf32>
    %76 = vector.shape_cast %68 : vector<8x32xf32> to vector<1x8x32xf32>
    tpu.vector_store %arg10[%c1_44, %c0_45, %c0_46], %76 {strides = array<i32>} : memref<2x8x32xf32, #tpu.memory_space<vmem>>, vector<1x8x32xf32>,
    %c0_47 = arith.constant 0 : index
    %c0_48 = arith.constant 0 : index
    %77 = vector.load %arg6[%c0_47, %c0_48] : memref<32x128xbf16, #tpu.memory_space<vmem>>, vector<32x128xbf16>
    %78 = arith.extf %77 : vector<32x128xbf16> to vector<32x128xf32>
    %cst_49 = arith.constant dense<0.000000e+00> : vector<8x128xf32>
    %79 = tpu.matmul %70, %78, %cst_49 {dimension_numbers = #tpu.dot_dimension_numbers<[1], [0], [0], [1], [0, 0, 1, 1], [], []>} : vector<8x32xf32>, vector<32x128xf32>, vector<8x128xf32> -> vector<8x128xf32>
    %c0_50 = arith.constant 0 : index
    %c0_51 = arith.constant 0 : index
    %80 = vector.load %arg7[%c0_50, %c0_51] : memref<1x128xf32, #tpu.memory_space<vmem>>, vector<1x128xf32>
    %81 = vector.broadcast %80 : vector<1x128xf32> to vector<8x128xf32>
    %82 = arith.addf %79, %81 : vector<8x128xf32>
    %c0_52 = arith.constant 0 : index
    %c0_53 = arith.constant 0 : index
    %83 = vector.load %arg8[%c0_52, %c0_53] : memref<8x128xf32, #tpu.memory_space<vmem>>, vector<8x128xf32>
    tpu.vector_store %arg8[%c0_52, %c0_53], %82 {strides = array<i32>} : memref<8x128xf32, #tpu.memory_space<vmem>>, vector<8x128xf32>,
    return
  }
}

</mosaic_0001>

<bundles_post_ra>
// kernel: tpu_custom_call.1
= control target key start
LH: loop header
LB: loop body
LE: loop exit
PB: predicated region body
PF: predicated region fallthrough
CT: control target
= control target key end

     0   :  { %16 = vsyncpa [#allocation3], 0  ;;  %s1266_s0 = inlined_call_operand.vmem [shape: f32[8,32], index: 0, kind: input, shape index: {}]   ;;  %s1267_s1 = inlined_call_operand.hbm [shape: f32[2,8,32], index: 1, kind: input, shape index: {}, may-alias: {1,9}]   ;;  %s1268_s2 = inlined_call_operand.hbm [shape: f32[2,8,32], index: 2, kind: input, shape index: {}, may-alias: {2,10}]   ;;  %s1269_s3 = inlined_call_operand.vmem [shape: bf16[2,32,128], index: 3, kind: input, shape index: {}]   ;;  %s1270_s4 = inlined_call_operand.vmem [shape: bf16[2,32,128], index: 4, kind: input, shape index: {}]   ;;  %s1271_s5 = inlined_call_operand.vmem [shape: f32[2,1,128], index: 5, kind: input, shape index: {}]   ;;  %s1272_s6 = inlined_call_operand.hbm [shape: bf16[32,128], index: 6, kind: input, shape index: {}]   ;;  %s1273_s7 = inlined_call_operand.hbm [shape: f32[1,128], index: 7, kind: input, shape index: {}]   ;;  %s1274_s8 = inlined_call_operand.hbm [shape: f32[8,128], index: 8, kind: output, shape index: {0}]   ;;  %s1275_s9 = inlined_call_operand.hbm [shape: f32[2,8,32], index: 9, kind: output, shape index: {1}, may-alias: {1,9}]   ;;  %s1276_s10 = inlined_call_operand.hbm [shape: f32[2,8,32], index: 10, kind: output, shape index: {2}, may-alias: {2,10}]  }
   0x1   :  { %17 = vsyncpa [#allocation6], 0 }
   0x2   :  { %18 = vsyncpa [#allocation9], 0 }
   0x3   :  { %19 = vsyncpa [#allocation4], 0 }
   0x4   :  { %20 = vsyncpa [#allocation12], 0  ;;  %s1023_s13 = smov [#allocation5]   ;;  %s1024_s15 = smov [#allocation2]  }
   0x5   :  { %s40_s14 = sshll.u32 %s1023_s13, 4  ;;  %s28_s16 = sshll.u32 %s1024_s15, 4  ;;  %s41_s14 = int_to_ptr.vmem [resolvable:$true] %s40_s14  ;;  %s1094_s16 = int_to_ptr.vmem [resolvable:$true] %s28_s16 }
   0x6   :  { %s859_s19 = scalar_lea.hbm %s1268_s2, 256 }
   0x7   :  { %p860_p0 = scmp.ne.s32.totalorder %s1268_s2, %s859_s19  ;;  %p863_p1 = scmp.lt.u32.totalorder %s859_s19, %s1268_s2 }
   0x9   :  { %p865_p2 = pnand %p863_p1, %p860_p0 }
   0xb   :  { %868 = shalt.err (!%p865_p2)
}
   0xc   :  { %s869_s24 = scalar_lea.vmem %s41_s14, 256  ;;  %p874_p4 = scmp.lt.s32.totalorder %s41_s14, %s41_s14 }
   0xd   :  { %p870_p3 = scmp.ne.s32.totalorder %s41_s14, %s869_s24  ;;  %p875_p5 = scmp.lt.s32.totalorder %s869_s24, %s869_s24 }
   0xf   :  { %p876_p6 = por %p875_p5, %p874_p4 }
  0x11   :  { %p877_p7 = pnand %p876_p6, %p870_p3 }
  0x13   :  { %880 = shalt.err (!%p877_p7)
}
  0x14   :  { %s1025_s25 = smov 128   ;;  %s1026_s26 = smov 8  }
  0x15   :  { %46 = dma.hbm_to_vmem [thread:$0]  %s1268_s2, 256, %s41_s14, [#allocation6], %s1025_s25, %s1025_s25, %s1026_s26  }
  0x16   :  { %s881_s11 = scalar_lea.hbm %s1267_s1, 256 }
  0x17   :  { %p882_p8 = scmp.ne.s32.totalorder %s1267_s1, %s881_s11  ;;  %p885_p9 = scmp.lt.u32.totalorder %s881_s11, %s1267_s1 }
  0x19   :  { %p887_p10 = pnand %p885_p9, %p882_p8 }
  0x1b   :  { %890 = shalt.err (!%p887_p10)
}
  0x1c   :  { %s891_s18 = scalar_lea.vmem %s1094_s16, 256  ;;  %p896_p12 = scmp.lt.s32.totalorder %s1094_s16, %s1094_s16 }
  0x1d   :  { %p892_p11 = scmp.ne.s32.totalorder %s1094_s16, %s891_s18  ;;  %p897_p13 = scmp.lt.s32.totalorder %s891_s18, %s891_s18 }
  0x1f   :  { %p898_p0 = por %p897_p13, %p896_p12 }
  0x21   :  { %p899_p1 = pnand %p898_p0, %p892_p11 }
  0x23   :  { %902 = shalt.err (!%p899_p1)
}
  0x24   :  { %34 = dma.hbm_to_vmem [thread:$0]  %s1267_s1, 256, %s1094_s16, [#allocation3], %s1025_s25, %s1025_s25, %s1026_s26  }
  0x25   :  { %s1027_s19 = smov [#allocation7]   ;;  %s903_s23 = scalar_lea.hbm %s1272_s6, 256 }
  0x26   :  { %s58_s20 = sshll.u32 %s1027_s19, 4  ;;  %p904_p2 = scmp.ne.s32.totalorder %s1272_s6, %s903_s23  ;;  %s59_s20 = int_to_ptr.vmem [resolvable:$true] %s58_s20 }
  0x27   :  { %p907_p3 = scmp.lt.u32.totalorder %s903_s23, %s1272_s6 }
  0x29   :  { %p909_p4 = pnand %p907_p3, %p904_p2 }
  0x2b   :  { %912 = shalt.err (!%p909_p4)
}
  0x2c   :  { %s913_s30 = scalar_lea.vmem %s59_s20, 256  ;;  %p918_p6 = scmp.lt.s32.totalorder %s59_s20, %s59_s20 }
  0x2d   :  { %p914_p5 = scmp.ne.s32.totalorder %s59_s20, %s913_s30  ;;  %p919_p7 = scmp.lt.s32.totalorder %s913_s30, %s913_s30 }
  0x2f   :  { %p920_p8 = por %p919_p7, %p918_p6 }
  0x31   :  { %p921_p9 = pnand %p920_p8, %p914_p5 }
  0x33   :  { %924 = shalt.err (!%p921_p9)
}
  0x34   :  { %s1028_s1 = smov 64   ;;  %s1029_s16 = smov 4  }
  0x35   :  { %64 = dma.hbm_to_vmem [thread:$0]  %s1272_s6, 256, %s59_s20, [#allocation6], %s1028_s1, %s1028_s1, %s1029_s16  }
  0x36   :  { %s1030_s13 = smov [#allocation8]   ;;  %s925_s2 = scalar_lea.hbm %s1273_s7, 16 }
  0x37   :  { %s71_s15 = sshll.u32 %s1030_s13, 4  ;;  %p926_p10 = scmp.ne.s32.totalorder %s1273_s7, %s925_s2  ;;  %s72_s15 = int_to_ptr.vmem [resolvable:$true] %s71_s15 }
  0x38   :  { %p929_p11 = scmp.lt.u32.totalorder %s925_s2, %s1273_s7 }
  0x3a   :  { %p931_p12 = pnand %p929_p11, %p926_p10 }
  0x3c   :  { %934 = shalt.err (!%p931_p12)
}
  0x3d   :  { %s935_s23 = scalar_lea.vmem %s72_s15, 16  ;;  %s939_s6 = scalar_lea.vmem %s72_s15, 32 }
  0x3e   :  { %p936_p13 = scmp.ne.s32.totalorder %s72_s15, %s935_s23  ;;  %p940_p0 = scmp.lt.s32.totalorder %s72_s15, %s72_s15 }
  0x3f   :  { %p941_p1 = scmp.lt.s32.totalorder %s939_s6, %s935_s23 }
  0x41   :  { %p942_p2 = por %p941_p1, %p940_p0 }
  0x43   :  { %p943_p3 = pnand %p942_p2, %p936_p13 }
  0x45   :  { %946 = shalt.err (!%p943_p3)
}
  0x46   :  { %74 = dma.hbm_to_vmem [thread:$0]  %s1273_s7, 16, %s72_s15, [#allocation9]  }
  0x47   :  { %1013 = dma.done.wait [#allocation3], 256  }
  0x48   :  { %1014 = vsyncadd [#allocation3], 4294967040 }
  0x49   :  { %1015 = dma.done.wait [#allocation6], 512  }
  0x4a   :  { %1016 = vsyncadd [#allocation6], 4294966784 }
  0x4b   :  { %1017 = dma.done.wait [#allocation9], 16  }
  0x4c   :  { %1018 = vsyncadd [#allocation9], 4294967280  ;;  %v1031_v0 = vmov 0.0|0.0   ;;  %vm1032_vm0 = vmmov 0   ;;  %v1033_v1 = vmov 0.0   ;;  %v679_v2 = vld [vmem:[%s1270_s4] sm:$0xff]  }
  0x4d   :  { %797 = vmatprep.subr.bf16.mxu0 %v1031_v0  ;;  %803 = vmatprep.subr.bf16.mxu1 %v1031_v0  ;;  %v671_v3 = vld [vmem:[%s1269_s3] sm:$0xff]   ;;  %v711_v4 = vld [vmem:[%s1270_s4 + $0x8] sm:$0xff]   ;;  %vm106_vm1 = vcmask 261120   ;;  %v89_v16 = vld [vmem:[#allocation5] sm:$0xff]  ;;  %s1036_s24 = smov [#allocation11]  }
  0x4e   :  { %750 = vmatprep.mubr.msk.f32.mxu0 %vm1032_vm0, %v1033_v1  ;;  %761 = vmatprep.mubr.msk.f32.mxu1 %vm1032_vm0, %v1033_v1  ;;  %v710_v5 = vld [vmem:[%s1269_s3 + $0x8] sm:$0xff]   ;;  %v88_v6 = vld [vmem:[#allocation2] sm:$0xff]  ;;  %v714_v27 = vld [vmem:[%s1270_s4 + $0x10] sm:$0xff]  }
  0x4f   :  { %799 = vmatpush3.bf16.msra.mxu0 %v679_v2  ;;  %805 = vmatpush3.bf16.msra.mxu1 %v671_v3  ;;  %v87_v7 = vld [vmem:[%s1266_s0] sm:$0xff]  ;;  %s1034_s0 = smov 32   ;;  %v712_v28 = vld [vmem:[%s1269_s3 + $0x10] sm:$0xff]   ;;  %v715_v29 = vld [vmem:[%s1270_s4 + $0x18] sm:$0xff]  }
  0x50   :  { %800 = vmatprep.subr.bf16.mxu0 %v1031_v0  ;;  %806 = vmatprep.subr.bf16.mxu1 %v1031_v0  ;;  %v653_v10 = vld [vmem:[%s1271_s5] ss:$0 sm:$0xff]  ;;  %v713_v30 = vld [vmem:[%s1269_s3 + $0x18] sm:$0xff]   ;;  %v300_v31 = vld [vmem:[#allocation2 + $0x8] sm:$0xff] }
  0x51   :  { %v302_v35 = vld [vmem:[#allocation5 + $0x8] sm:$0xff]  ;;  %v666_v40 = vld [vmem:[%s1271_s5 + $0x1] ss:$0 sm:$0xff]  ;;  %v716_v56 = vld [vmem:[#allocation7 + $0x8] sm:$0xff]   ;;  %s1035_s5 = smov 96  }
  0x52   :  { %v703_v55 = vld [vmem:[#allocation7] sm:$0xff]  }
  0x53   :  { %802 = vmatpush3.bf16.msra.mxu0 %v711_v4  ;;  %808 = vmatpush3.bf16.msra.mxu1 %v710_v5 }
  0x54   :  { %809 = vmatprep.subr.bf16.mxu0 %v1031_v0  ;;  %815 = vmatprep.subr.bf16.mxu1 %v1031_v0 }
  0x56   :  { %751 = vmatmul.mubr.msk.f32.vlgmr.msra.gmra.mrb[0].mxu0 %vm106_vm1, %v88_v6  ;;  %762 = vmatmul.mubr.msk.f32.vlgmr.msra.gmra.mrb[0].mxu1 %vm106_vm1, %v87_v7 }
  0x57   :  { %772 = vmatprep.mubr.msk.f32.mxu0 %vm1032_vm0, %v1033_v1  ;;  %783 = vmatprep.mubr.msk.f32.mxu1 %vm1032_vm0, %v1033_v1 }
  0x58   :  { %811 = vmatpush3.bf16.msra.mxu0 %v714_v27  ;;  %817 = vmatpush3.bf16.msra.mxu1 %v712_v28 }
  0x59   :  { %812 = vmatprep.subr.bf16.mxu0 %v1031_v0  ;;  %818 = vmatprep.subr.bf16.mxu1 %v1031_v0 }
  0x5c   :  { %814 = vmatpush3.bf16.msra.mxu0 %v715_v29  ;;  %820 = vmatpush3.bf16.msra.mxu1 %v713_v30 }
  0x5d   :  { %821 = vmatprep.subr.bf16.mxu0 %v1031_v0 }
  0x5f   :  { %773 = vmatmul.mubr.msk.f32.vlgmr.msra.gmra.mrb[2].mxu0 %vm106_vm1, %v300_v31 }
  0x60   :  { %794 = vmatprep.mubr.msk.f32.mxu0 %vm1032_vm0, %v1033_v1  ;;  %823 = vmatpush3.bf16.msra.mxu0 %v703_v55 }
  0x61   :  { %824 = vmatprep.subr.bf16.mxu0 %v1031_v0 }
  0x64   :  { %826 = vmatpush3.bf16.msra.mxu0 %v716_v56 }
 0x129   :  { %v176_v8 = vpop.f32.mrb[0].mxu0  ;;  %v249_v9 = vpop.f32.mrb[0].mxu1 }
 0x12a   :  { %v250_v11 = vadd.f32 %v249_v9, %v176_v8  ;;  %v752_v12 = vpop.f32.mrb[1].mxu0  ;;  %v763_v13 = vpop.f32.mrb[1].mxu1 }
 0x12c   :  { %v260_v14 = vadd.f32 %v653_v10, %v250_v11 }
 0x12e   :  { %843 = vtanh.f32 %v260_v14  ;;  %v654_v17 = vmul.f32 -1.442695, %v260_v14 }
 0x130   :  { %845 = vpow2.f32 %v654_v17 }
 0x132   :  { %v390_v36 = vpop.f32.mrb[2].mxu0 }
 0x133   :  { %v774_v37 = vpop.f32.mrb[3].mxu0 }
 0x138   :  { %v844_v15 = vpop.eup %843 }
 0x139   :  { %274 = vrot.lane.b32.xlu0 %v844_v15, %s1028_s1 }
 0x13a   :  { %v846_v18 = vpop.eup %845 }
 0x13b   :  { %v264_v19 = vadd.f32 1.0, %v846_v18 }
 0x13d   :  { %269 = vrot.lane.b32.xlu0 %v89_v16, %s1034_s0  ;;  %847 = vrcp.f32 %v264_v19 }
 0x147   :  { %v848_v20 = vpop.eup %847 }
 0x1ab   :  { %v275_v21 = vpop.permute.xlu0 %274 }
 0x1ac   :  { %v277_v22 = vmul.f32 %v848_v20, %v275_v21 }
 0x1ae   :  { %279 = vrot.lane.b32.xlu1 %v277_v22, %s1034_s0 }
 0x1af   :  { %v270_v23 = vpop.permute.xlu0 %269 }
 0x1b0   :  { %v272_v24 = vmul.f32 %v848_v20, %v270_v23 }
 0x220   :  { %v280_v25 = vpop.permute.xlu1 %279 }
 0x221   :  { %v282_v26 = vadd.f32 %v280_v25, %v272_v24 }
 0x223   :  { %849 = vtanh.f32 %v282_v26 }
 0x22d   :  { %v850_v32 = vpop.eup %849 }
 0x22e   :  { %285 = vrot.lane.b32.xlu1 %v850_v32, %s1028_s1 }
 0x2a0   :  { %v286_v33 = vpop.permute.xlu1 %285 }
 0x2a1   :  { %v288_v34 = vmul.f32 %v848_v20, %v286_v33 }
 0x2a3   :  { %290 = vrot.lane.b32.xlu0 %v288_v34, %s1034_s0 }
 0x2a7   :  { %483 = vrot.lane.b32.xlu0 %v302_v35, %s1034_s0 }
 0x315   :  { %v291_v38 = vpop.permute.xlu0 %290 }
 0x316   :  { %293 = vst.msk [vmem:[#allocation11] sm:$0xff] %vm106_vm1, %v291_v38  ;;  %784 = vmatmul.mubr.msk.f32.vlgmr.msra.gmra.mrb[2].mxu1 %vm106_vm1, %v291_v38 }
 0x319   :  { %v484_v51 = vpop.permute.xlu0 %483 }
 0x3e9   :  { %v462_v39 = vpop.f32.mrb[2].mxu1 }
 0x3ea   :  { %v463_v41 = vadd.f32 %v462_v39, %v390_v36  ;;  %v785_v42 = vpop.f32.mrb[3].mxu1 }
 0x3ec   :  { %v474_v43 = vadd.f32 %v666_v40, %v463_v41 }
 0x3ee   :  { %851 = vtanh.f32 %v474_v43  ;;  %v667_v45 = vmul.f32 -1.442695, %v474_v43 }
 0x3f0   :  { %853 = vpow2.f32 %v667_v45 }
 0x3f8   :  { %v852_v44 = vpop.eup %851 }
 0x3f9   :  { %488 = vrot.lane.b32.xlu1 %v852_v44, %s1028_s1 }
 0x3fa   :  { %v854_v46 = vpop.eup %853 }
 0x3fb   :  { %v478_v47 = vadd.f32 1.0, %v854_v46 }
 0x3fd   :  { %855 = vrcp.f32 %v478_v47 }
 0x407   :  { %v856_v48 = vpop.eup %855 }
 0x408   :  { %v486_v52 = vmul.f32 %v856_v48, %v484_v51 }
 0x46b   :  { %v489_v49 = vpop.permute.xlu1 %488 }
 0x46c   :  { %v491_v50 = vmul.f32 %v856_v48, %v489_v49 }
 0x46e   :  { %493 = vrot.lane.b32.xlu1 %v491_v50, %s1034_s0 }
 0x4e0   :  { %v494_v53 = vpop.permute.xlu1 %493 }
 0x4e1   :  { %v496_v54 = vadd.f32 %v494_v53, %v486_v52 }
 0x4e3   :  { %857 = vtanh.f32 %v496_v54 }
 0x4ed   :  { %v858_v57 = vpop.eup %857 }
 0x4ee   :  { %499 = vrot.lane.b32.xlu0 %v858_v57, %s1028_s1  ;;  %s618_s1 = sshll.u32 %s1036_s24, 4  ;;  %s619_s1 = int_to_ptr.vmem [resolvable:$true] %s618_s1 }
 0x4ef   :  { %s947_s27 = scalar_lea.vmem %s619_s1, 256  ;;  %p952_p5 = scmp.lt.s32.totalorder %s619_s1, %s619_s1 }
 0x4f0   :  { %p948_p4 = scmp.ne.s32.totalorder %s619_s1, %s947_s27  ;;  %p953_p6 = scmp.lt.s32.totalorder %s947_s27, %s947_s27 }
 0x4f2   :  { %295 = vrot.lane.b32.xlu0 %v282_v26, %s1035_s5  ;;  %p954_p7 = por %p953_p6, %p952_p5 }
 0x4f4   :  { %p955_p8 = pnand %p954_p7, %p948_p4 }
 0x560   :  { %v500_v58 = vpop.permute.xlu0 %499 }
 0x561   :  { %v502_v59 = vmul.f32 %v856_v48, %v500_v58 }
 0x563   :  { %504 = vrot.lane.b32.xlu1 %v502_v59, %s1034_s0 }
 0x564   :  { %v296_v60 = vpop.permute.xlu0 %295 }
 0x565   :  { %298 = vst.msk [vmem:[#allocation13] sm:$0xff] %vm106_vm1, %v296_v60 }
 0x567   :  { %510 = vrot.lane.b32.xlu1 %v496_v54, %s1035_s5 }
 0x5d5   :  { %v505_v61 = vpop.permute.xlu1 %504 }
 0x5d6   :  { %508 = vst.msk [vmem:[#allocation11 + $0x8] sm:$0xff] %vm106_vm1, %v505_v61  ;;  %795 = vmatmul.mubr.msk.f32.vlgmr.msra.gmra.mrb[4].mxu0 %vm106_vm1, %v505_v61 }
 0x5d9   :  { %v511_v62 = vpop.permute.xlu1 %510 }
 0x5da   :  { %514 = vst.msk [vmem:[#allocation13 + $0x8] sm:$0xff] %vm106_vm1, %v511_v62 }
 0x5db   :  { %958 = shalt.err (!%p955_p8)
}
 0x5dc   :  { %s959_s29 = scalar_lea.hbm %s1275_s9, 256 }
 0x5dd   :  { %p960_p9 = scmp.ne.s32.totalorder %s1275_s9, %s959_s29  ;;  %p963_p10 = scmp.lt.u32.totalorder %s959_s29, %s1275_s9 }
 0x5df   :  { %p965_p11 = pnand %p963_p10, %p960_p9 }
 0x5e1   :  { %968 = shalt.err (!%p965_p11)
}
 0x5e2   :  { %624 = dma.vmem_to_hbm [thread:$0]  %s619_s1, 256, %s1275_s9, [#allocation12], %s1025_s25, %s1025_s25, %s1026_s26  }
 0x5e3   :  { %s1037_s17 = smov [#allocation13]  }
 0x5e4   :  { %s630_s18 = sshll.u32 %s1037_s17, 4  ;;  %s631_s18 = int_to_ptr.vmem [resolvable:$true] %s630_s18 }
 0x5e5   :  { %s969_s0 = scalar_lea.vmem %s631_s18, 256  ;;  %p974_p13 = scmp.lt.s32.totalorder %s631_s18, %s631_s18 }
 0x5e6   :  { %p970_p12 = scmp.ne.s32.totalorder %s631_s18, %s969_s0  ;;  %p975_p0 = scmp.lt.s32.totalorder %s969_s0, %s969_s0 }
 0x5e8   :  { %p976_p1 = por %p975_p0, %p974_p13 }
 0x5ea   :  { %p977_p2 = pnand %p976_p1, %p970_p12 }
 0x5ec   :  { %980 = shalt.err (!%p977_p2)
}
 0x5ed   :  { %s981_s19 = scalar_lea.hbm %s1276_s10, 256 }
 0x5ee   :  { %p982_p3 = scmp.ne.s32.totalorder %s1276_s10, %s981_s19  ;;  %p985_p4 = scmp.lt.u32.totalorder %s981_s19, %s1276_s10 }
 0x5f0   :  { %p987_p5 = pnand %p985_p4, %p982_p3 }
 0x5f2   :  { %990 = shalt.err (!%p987_p5)
}
 0x5f3   :  { %636 = dma.vmem_to_hbm [thread:$0]  %s631_s18, 256, %s1276_s10, [#allocation12], %s1025_s25, %s1025_s25, %s1026_s26   ;;  %v668_v63 = vld [vmem:[#allocation8] ss:$0 sm:$0xff] }
 0x5f4   :  { %s1038_s3 = smov [#allocation10]  }
 0x5f5   :  { %s609_s4 = sshll.u32 %s1038_s3, 4  ;;  %s610_s4 = int_to_ptr.vmem [resolvable:$true] %s609_s4 }
 0x5f6   :  { %s991_s5 = scalar_lea.vmem %s610_s4, 128  ;;  %p996_p7 = scmp.lt.s32.totalorder %s610_s4, %s610_s4 }
 0x5f7   :  { %p992_p6 = scmp.ne.s32.totalorder %s610_s4, %s991_s5  ;;  %p997_p8 = scmp.lt.s32.totalorder %s991_s5, %s991_s5 }
 0x5f9   :  { %p998_p9 = por %p997_p8, %p996_p7 }
 0x5fb   :  { %p999_p10 = pnand %p998_p9, %p992_p6 }
 0x6a9   :  { %v598_v0 = vpop.f32.mrb[4].mxu0 }
 0x6aa   :  { %v599_v1 = vadd.f32 %v668_v63, %v598_v0  ;;  %v796_v2 = vpop.f32.mrb[5].mxu0 }
 0x6ac   :  { %602 = vst [vmem:[#allocation10] sm:$0xff] %v599_v1 }
 0x6ad   :  { %1002 = shalt.err (!%p999_p10)
}
 0x6ae   :  { %s1003_s27 = scalar_lea.hbm %s1274_s8, 128 }
 0x6af   :  { %p1004_p11 = scmp.ne.s32.totalorder %s1274_s8, %s1003_s27  ;;  %p1007_p12 = scmp.lt.u32.totalorder %s1003_s27, %s1274_s8 }
 0x6b1   :  { %p1009_p13 = pnand %p1007_p12, %p1004_p11 }
 0x6b3   :  { %1012 = shalt.err (!%p1009_p13)
}
 0x6b4   :  { %612 = dma.vmem_to_hbm [thread:$0]  %s610_s4, 128, %s1274_s8, [#allocation4]  }
 0x6b5   :  { %1019 = dma.done.wait [#allocation4], 128  }
 0x6b6   :  { %1020 = vsyncadd [#allocation4], 4294967168 }
 0x6b7   :  { %1021 = dma.done.wait [#allocation12], 512  }
 0x6b8   :  { %1022 = vsyncadd [#allocation12], 4294966784 }
 0x6b9   :  { %646 = vsyncpa [#allocation3], 1 }
 0x6ba   :  { %647 = vsyncpa [#allocation6], 1 }
 0x6bb   :  { %648 = vsyncpa [#allocation9], 1 }
 0x6bc   :  { %649 = vsyncpa [#allocation4], 1 }
 0x6bd   :  { %650 = vsyncpa [#allocation12], 1 }

</bundles_post_ra>
